<compile_context>
chip_gen: v6e
topology: v6e:2x2x1
jax: 0.10.0
libtpu: 0.0.40
codegen_flags: <defaults>
</compile_context>

<pallas_src>
import functools

import jax
import jax.numpy as jnp
from jax import lax
from jax.experimental import pallas as pl
from jax.experimental.pallas import tpu as pltpu

LANES = 128
_SCALE = 255.0 * 255.0      # exact scalar factor, applied once at the end


def _device_kind():
    try:
        return jax.devices()[0].device_kind.lower()
    except Exception:
        return ""


def _kaggle_loss_kernel(tile_r, blocks_per_core, n_rows,
                        x_ref, y_ref, out_ref):
    p = pl.program_id(0)          # TensorCore shard (size 1 on v5e/v6e)
    j = pl.program_id(1)          # reduction step within this shard

    @pl.when(j == 0)
    def _():
        out_ref[...] = jnp.zeros_like(out_ref)

    # Hot loop: full-vreg element-wise VPU work only (sub, mul, acc-adds).
    d = x_ref[...].astype(jnp.float32) - y_ref[...].astype(jnp.float32)
    sq = d * d

    row0 = (p * blocks_per_core + j) * tile_r

    # Fast path (common case): tile lies fully inside the real array.
    @pl.when(row0 + tile_r <= n_rows)
    def _():
        out_ref[...] += jnp.sum(sq.reshape(tile_r // 8, 8, LANES), axis=0)

    # Boundary / clamped-duplicate tile: rows past the real array end must
    # contribute zero (boundary blocks contain unspecified data).
    @pl.when(row0 + tile_r > n_rows)
    def _():
        row_idx = row0 + lax.broadcasted_iota(jnp.int32, sq.shape, 0)
        masked = jnp.where(row_idx < n_rows, sq, jnp.float32(0.0))
        out_ref[...] += jnp.sum(masked.reshape(tile_r // 8, 8, LANES), axis=0)


def kaggle_loss(x, y):
    """MSE(x*255, y*255) with 'mean' reduction (PyTorch KaggleLoss forward)."""
    assert x.shape == y.shape, "input and target must have the same shape"
    n = x.size
    if n == 0:
        return jnp.float32(jnp.nan)   # torch MSELoss(mean) on empty -> nan

    def _prep(a):
        # Keep f32 / bf16 as-is (no HBM-doubling upcast copy); cast others.
        if a.dtype not in (jnp.float32, jnp.bfloat16):
            a = a.astype(jnp.float32)
        return a.reshape(-1)

    xf = _prep(x)
    yf = _prep(y)

    # Lane-dense layout.  Typical image tensors have numel % 128 == 0, so this
    # is a pure (no-copy) reshape; the zero-pad path only triggers on awkward
    # sizes (padded zeros give diff == 0, so they don't perturb the sum).
    rows, rem = divmod(n, LANES)
    if rem:
        pad = LANES - rem
        xf = jnp.pad(xf, (0, pad))
        yf = jnp.pad(yf, (0, pad))
        rows += 1

    x2d = xf.reshape(rows, LANES)
    y2d = yf.reshape(rows, LANES)

    kind = _device_kind()
    is_v7x = ("v7" in kind) or ("7x" in kind)

    # v5e/v6e measured to plateau near roofline at 1024-row tiles; v7x's faster
    # HBM makes the fixed per-step overhead relatively larger, so go bigger.
    max_tile_r = 2048 if is_v7x else 1024
    # Multiple of 16 rows: satisfies the bf16 (16,128) min-tile constraint and
    # is trivially fine for f32.
    tile_r = min(max_tile_r, ((rows + 15) // 16) * 16)
    num_blocks = (rows + tile_r - 1) // tile_r

    # Only shard the row range across TensorCores on 2-TC chips (v7x); on
    # single-TC chips the split would just be a serial loop with a wasted
    # clamped duplicate-tile fetch.
    num_cores = 2 if (is_v7x and num_blocks >= 2) else 1
    blocks_per_core = (num_blocks + num_cores - 1) // num_cores

    def in_index_map(p, j):
        blk = p * blocks_per_core + j
        # Clamp blocks past the end (possible only in the 2-core config with an
        # odd num_blocks); the in-kernel masked path zeroes their contribution.
        return (jnp.minimum(blk, num_blocks - 1), 0)

    kernel = functools.partial(
        _kaggle_loss_kernel, tile_r, blocks_per_core, rows)

    lead_sem = pltpu.CORE_PARALLEL if num_cores == 2 else pltpu.ARBITRARY

    out_bytes = num_cores * 8 * LANES * 4
    cost = pl.CostEstimate(
        flops=3 * n,
        transcendentals=0,
        bytes_accessed=(x2d.size * x2d.dtype.itemsize
                        + y2d.size * y2d.dtype.itemsize
                        + out_bytes),
    )

    partials = pl.pallas_call(
        kernel,
        out_shape=jax.ShapeDtypeStruct((num_cores * 8, LANES), jnp.float32),
        grid_spec=pltpu.PrefetchScalarGridSpec(
            num_scalar_prefetch=0,
            grid=(num_cores, blocks_per_core),
            in_specs=[
                pl.BlockSpec((tile_r, LANES), in_index_map),
                pl.BlockSpec((tile_r, LANES), in_index_map),
            ],
            # Output block index is constant along j -> resident accumulator.
            out_specs=pl.BlockSpec((8, LANES), lambda p, j: (p, 0)),
        ),
        compiler_params=pltpu.CompilerParams(
            dimension_semantics=(lead_sem, pltpu.ARBITRARY),
        ),
        cost_estimate=cost,
    )(x2d, y2d)

    # Tiny finalize: combine per-core partials, apply 255^2 once, divide by
    # the true element count.
    return jnp.sum(partials) * jnp.float32(_SCALE) / jnp.float32(n)


if __name__ == "__main__":
    key = jax.random.PRNGKey(0)
    k1, k2 = jax.random.split(key)
    shape = (2, 4, 16, 16)     # NCHW images / labels in [0, 1]
    x = jax.random.uniform(k1, shape, dtype=jnp.float32)
    y = jax.random.uniform(k2, shape, dtype=jnp.float32)

    loss = kaggle_loss(x, y)
    jax.block_until_ready(loss)

    # sanity check against a pure-JAX reference
    ref = jnp.mean((x * 255.0 - y * 255.0) ** 2)
    assert jnp.allclose(loss, ref, rtol=1e-5, atol=1e-3), (loss, ref)

    print("KERNEL_OK")
</pallas_src>

<mosaic_0001>
module attributes {stable_mosaic.version = 11 : i64} {
  func.func @_kaggle_loss_kernel(%arg0: i32, %arg1: i32, %arg2: memref<16x128xf32, #tpu.memory_space<vmem>>, %arg3: memref<16x128xf32, #tpu.memory_space<vmem>>, %arg4: memref<8x128xf32, #tpu.memory_space<vmem>>) attributes {dimension_semantics = [#tpu.dimension_semantics<arbitrary>, #tpu.dimension_semantics<arbitrary>], iteration_bounds = array<i64: 1, 1>, scalar_prefetch = 0 : i64, scratch_operands = 0 : i64, tpu.core_type = #tpu.core_type<tc>, window_params = [{transform_indices = @transform_0, window_bounds = array<i64: 16, 128>}, {transform_indices = @transform_1, window_bounds = array<i64: 16, 128>}, {transform_indices = @transform_2, window_bounds = array<i64: 8, 128>}]} {
    %c0_i32 = arith.constant 0 : i32
    %0 = arith.cmpi eq, %arg1, %c0_i32 : i32
    %1 = arith.extui %0 : i1 to i32
    %c0_i32_0 = arith.constant 0 : i32
    %2 = arith.cmpi ne, %1, %c0_i32_0 : i32
    scf.if %2 {
      %cst = arith.constant 0.000000e+00 : f32
      %18 = vector.broadcast %cst : f32 to vector<8x128xf32>
      %c0_10 = arith.constant 0 : index
      %c0_11 = arith.constant 0 : index
      %19 = vector.load %arg4[%c0_10, %c0_11] : memref<8x128xf32, #tpu.memory_space<vmem>>, vector<8x128xf32>
      tpu.vector_store %arg4[%c0_10, %c0_11], %18 {strides = array<i32>} : memref<8x128xf32, #tpu.memory_space<vmem>>, vector<8x128xf32>,
    } else {
    }
    %c0 = arith.constant 0 : index
    %c0_1 = arith.constant 0 : index
    %3 = vector.load %arg2[%c0, %c0_1] : memref<16x128xf32, #tpu.memory_space<vmem>>, vector<16x128xf32>
    %c0_2 = arith.constant 0 : index
    %c0_3 = arith.constant 0 : index
    %4 = vector.load %arg3[%c0_2, %c0_3] : memref<16x128xf32, #tpu.memory_space<vmem>>, vector<16x128xf32>
    %5 = arith.subf %3, %4 : vector<16x128xf32>
    %6 = arith.mulf %5, %5 : vector<16x128xf32>
    %c1_i32 = arith.constant 1 : i32
    %7 = arith.muli %arg0, %c1_i32 : i32
    %8 = arith.addi %7, %arg1 : i32
    %c16_i32 = arith.constant 16 : i32
    %9 = arith.muli %8, %c16_i32 : i32
    %c16_i32_4 = arith.constant 16 : i32
    %10 = arith.addi %9, %c16_i32_4 : i32
    %c16_i32_5 = arith.constant 16 : i32
    %11 = arith.cmpi sle, %10, %c16_i32_5 : i32
    %12 = arith.extui %11 : i1 to i32
    %c0_i32_6 = arith.constant 0 : i32
    %13 = arith.cmpi ne, %12, %c0_i32_6 : i32
    scf.if %13 {
      %c0_10 = arith.constant 0 : index
      %c0_11 = arith.constant 0 : index
      %18 = vector.load %arg4[%c0_10, %c0_11] : memref<8x128xf32, #tpu.memory_space<vmem>>, vector<8x128xf32>
      %19 = vector.shape_cast %6 : vector<16x128xf32> to vector<2x8x128xf32>
      %cst = arith.constant dense<0.000000e+00> : vector<8x128xf32>
      %20 = vector.multi_reduction <add>, %19, %cst [0] : vector<2x8x128xf32> to vector<8x128xf32>
      %21 = arith.addf %18, %20 : vector<8x128xf32>
      %c0_12 = arith.constant 0 : index
      %c0_13 = arith.constant 0 : index
      %22 = vector.load %arg4[%c0_12, %c0_13] : memref<8x128xf32, #tpu.memory_space<vmem>>, vector<8x128xf32>
      tpu.vector_store %arg4[%c0_12, %c0_13], %21 {strides = array<i32>} : memref<8x128xf32, #tpu.memory_space<vmem>>, vector<8x128xf32>,
    } else {
    }
    %c16_i32_7 = arith.constant 16 : i32
    %14 = arith.addi %9, %c16_i32_7 : i32
    %c16_i32_8 = arith.constant 16 : i32
    %15 = arith.cmpi sgt, %14, %c16_i32_8 : i32
    %16 = arith.extui %15 : i1 to i32
    %c0_i32_9 = arith.constant 0 : i32
    %17 = arith.cmpi ne, %16, %c0_i32_9 : i32
    scf.if %17 {
      %18 = tpu.iota {dimensions = array<i32: 0>} : vector<16x128xi32>
      %19 = vector.broadcast %9 : i32 to vector<16x128xi32>
      %20 = arith.addi %19, %18 : vector<16x128xi32>
      %c16_i32_10 = arith.constant 16 : i32
      %21 = vector.broadcast %c16_i32_10 : i32 to vector<16x128xi32>
      %22 = arith.cmpi slt, %20, %21 : vector<16x128xi32>
      %cst = arith.constant 0.000000e+00 : f32
      %23 = vector.broadcast %cst : f32 to vector<16x128xf32>
      %24 = arith.select %22, %6, %23 : vector<16x128xi1>, vector<16x128xf32>
      %c0_11 = arith.constant 0 : index
      %c0_12 = arith.constant 0 : index
      %25 = vector.load %arg4[%c0_11, %c0_12] : memref<8x128xf32, #tpu.memory_space<vmem>>, vector<8x128xf32>
      %26 = vector.shape_cast %24 : vector<16x128xf32> to vector<2x8x128xf32>
      %cst_13 = arith.constant dense<0.000000e+00> : vector<8x128xf32>
      %27 = vector.multi_reduction <add>, %26, %cst_13 [0] : vector<2x8x128xf32> to vector<8x128xf32>
      %28 = arith.addf %25, %27 : vector<8x128xf32>
      %c0_14 = arith.constant 0 : index
      %c0_15 = arith.constant 0 : index
      %29 = vector.load %arg4[%c0_14, %c0_15] : memref<8x128xf32, #tpu.memory_space<vmem>>, vector<8x128xf32>
      tpu.vector_store %arg4[%c0_14, %c0_15], %28 {strides = array<i32>} : memref<8x128xf32, #tpu.memory_space<vmem>>, vector<8x128xf32>,
    } else {
    }
    return
  }
  func.func @transform_0(%arg0: i32, %arg1: i32) -> (i32, i32) {
    %c1_i32 = arith.constant 1 : i32
    %0 = arith.muli %arg0, %c1_i32 : i32
    %1 = arith.addi %0, %arg1 : i32
    %c0_i32 = arith.constant 0 : i32
    %2 = arith.minsi %1, %c0_i32 : i32
    %c0_i32_0 = arith.constant 0 : i32
    %c0_i32_1 = arith.constant 0 : i32
    return %2, %c0_i32_0 : i32, i32
  }
  func.func @transform_1(%arg0: i32, %arg1: i32) -> (i32, i32) {
    %c1_i32 = arith.constant 1 : i32
    %0 = arith.muli %arg0, %c1_i32 : i32
    %1 = arith.addi %0, %arg1 : i32
    %c0_i32 = arith.constant 0 : i32
    %2 = arith.minsi %1, %c0_i32 : i32
    %c0_i32_0 = arith.constant 0 : i32
    %c0_i32_1 = arith.constant 0 : i32
    return %2, %c0_i32_0 : i32, i32
  }
  func.func @transform_2(%arg0: i32, %arg1: i32) -> (i32, i32) {
    %c0_i32 = arith.constant 0 : i32
    %c0_i32_0 = arith.constant 0 : i32
    return %arg0, %c0_i32 : i32, i32
  }
}

</mosaic_0001>

<bundles_post_ra>
// kernel: tpu_custom_call.1
= control target key start
LH: loop header
LB: loop body
LE: loop exit
PB: predicated region body
PF: predicated region fallthrough
CT: control target
= control target key end

     0   :  { %7 = vsyncpa [#allocation3], 0  ;;  %s223_s0 = inlined_call_operand.hbm [shape: f32[16,128], index: 0, kind: input, shape index: {}]   ;;  %s224_s1 = inlined_call_operand.hbm [shape: f32[16,128], index: 1, kind: input, shape index: {}]   ;;  %s225_s2 = inlined_call_operand.hbm [shape: f32[8,128], index: 2, kind: output, shape index: {}]  }
   0x1   :  { %8 = vsyncpa [#allocation6], 0 }
   0x2   :  { %9 = vsyncpa [#allocation4], 0  ;;  %s194_s9 = smov [#allocation2]  }
   0x3   :  { %s21_s10 = sshll.u32 %s194_s9, 4  ;;  %s22_s10 = int_to_ptr.vmem [resolvable:$true] %s21_s10 }
   0x4   :  { %s136_s11 = scalar_lea.vmem %s22_s10, 256  ;;  %p141_p1 = scmp.lt.s32.totalorder %s22_s10, %s22_s10 }
   0x5   :  { %p137_p0 = scmp.ne.s32.totalorder %s22_s10, %s136_s11  ;;  %p142_p2 = scmp.lt.s32.totalorder %s136_s11, %s136_s11 }
   0x7   :  { %p143_p3 = por %p142_p2, %p141_p1 }
   0x9   :  { %p144_p4 = pnand %p143_p3, %p137_p0 }
   0xb   :  { %147 = shalt.err (!%p144_p4)
}
   0xc   :  { %s195_s12 = smov 128   ;;  %s196_s13 = smov 8  }
   0xd   :  { %27 = dma.hbm_to_vmem [thread:$0]  %s223_s0, 256, %s22_s10, [#allocation3], %s195_s12, %s195_s12, %s196_s13  }
   0xe   :  { %s197_s16 = smov [#allocation5]  }
   0xf   :  { %s39_s17 = sshll.u32 %s197_s16, 4  ;;  %s40_s17 = int_to_ptr.vmem [resolvable:$true] %s39_s17 }
  0x10   :  { %s156_s18 = scalar_lea.vmem %s40_s17, 256  ;;  %p161_p6 = scmp.lt.s32.totalorder %s40_s17, %s40_s17 }
  0x11   :  { %p157_p5 = scmp.ne.s32.totalorder %s40_s17, %s156_s18  ;;  %p162_p7 = scmp.lt.s32.totalorder %s156_s18, %s156_s18 }
  0x13   :  { %p163_p8 = por %p162_p7, %p161_p6 }
  0x15   :  { %p164_p9 = pnand %p163_p8, %p157_p5 }
  0x17   :  { %167 = shalt.err (!%p164_p9)
}
  0x18   :  { %45 = dma.hbm_to_vmem [thread:$0]  %s224_s1, 256, %s40_s17, [#allocation6], %s195_s12, %s195_s12, %s196_s13  }
  0x19   :  { %188 = dma.done.wait [#allocation3], 256  }
  0x1a   :  { %189 = vsyncadd [#allocation3], 4294967040 }
  0x1b   :  { %190 = dma.done.wait [#allocation6], 256  }
  0x1c   :  { %191 = vsyncadd [#allocation6], 4294967040  ;;  %v65_v0 = vld [vmem:[#allocation2] sm:$0xff]  ;;  %v66_v1 = vld [vmem:[#allocation2 + $0x8] sm:$0xff]  ;;  %s198_s0 = smov [#allocation7]  }
  0x1d   :  { %v67_v2 = vld [vmem:[#allocation5] sm:$0xff]  ;;  %v68_v3 = vld [vmem:[#allocation5 + $0x8] sm:$0xff]  ;;  %s108_s21 = sshll.u32 %s198_s0, 4  ;;  %s109_s21 = int_to_ptr.vmem [resolvable:$true] %s108_s21 }
  0x1e   :  { %v69_v4 = vsub.f32 %v65_v0, %v67_v2  ;;  %v70_v5 = vsub.f32 %v66_v1, %v68_v3  ;;  %s168_s22 = scalar_lea.vmem %s109_s21, 128  ;;  %p173_p11 = scmp.lt.s32.totalorder %s109_s21, %s109_s21 }
  0x1f   :  { %p169_p10 = scmp.ne.s32.totalorder %s109_s21, %s168_s22  ;;  %p174_p12 = scmp.lt.s32.totalorder %s168_s22, %s168_s22 }
  0x20   :  { %v71_v6 = vmul.f32 %v69_v4, %v69_v4  ;;  %v72_v7 = vmul.f32 %v70_v5, %v70_v5 }
  0x21   :  { %p175_p13 = por %p174_p12, %p173_p11 }
  0x22   :  { %v81_v8 = vadd.f32 %v72_v7, %v71_v6 }
  0x23   :  { %p176_p0 = pnand %p175_p13, %p169_p10 }
  0x24   :  { %83 = vst [vmem:[#allocation7] sm:$0xff] %v81_v8 }
  0x25   :  { %179 = shalt.err (!%p176_p0)
}
  0x26   :  { %111 = dma.vmem_to_hbm [thread:$0]  %s109_s21, 128, %s225_s2, [#allocation4]  }
  0x27   :  { %192 = dma.done.wait [#allocation4], 128  }
  0x28   :  { %193 = vsyncadd [#allocation4], 4294967168 }
  0x29   :  { %115 = vsyncpa [#allocation3], 1 }
  0x2a   :  { %116 = vsyncpa [#allocation6], 1 }
  0x2b   :  { %117 = vsyncpa [#allocation4], 1 }

</bundles_post_ra>
